<compile_context>
chip_gen: v6e
topology: v6e:2x2x1
jax: 0.10.0
libtpu: 0.0.40
codegen_flags: <defaults>
</compile_context>

<pallas_src>
import functools

import jax
import jax.numpy as jnp
from jax.experimental import pallas as pl
from jax.experimental.pallas import tpu as pltpu


def _round_up(x, m):
    return (x + m - 1) // m * m


def _moe_kernel(x_ref, w_ref, b_ref, out_ref, *, num_experts, hp, approx_recip):
    E = num_experts
    EHp = E * hp

    x = x_ref[...]                                             # (tb, D) bf16

    # One fused, lane-dense MXU matmul producing [expert pre-acts | gate logits].
    fused = (
        jnp.dot(x, w_ref[...], preferred_element_type=jnp.float32)
        + b_ref[...]
    )                                                           # (tb, E*Hp + Gp) f32

    acts = jnp.maximum(fused[:, :EHp], 0.0)                     # (tb, E*Hp) ReLU'd experts
    logits = fused[:, EHp:]                                     # (tb, Gp); pad cols == -1e30

    # Softmax over experts (padding columns contribute exp(-huge) == 0 exactly).
    m = jnp.max(logits, axis=-1, keepdims=True)
    p = jnp.exp(logits - m)
    denom = jnp.sum(p, axis=-1, keepdims=True)
    if approx_recip:
        # EUP slot (frees VALU); gate rows sum to 1 only approximately.
        gate = p * pl.reciprocal(denom, approx=True)
    else:
        gate = p / denom

    # Weighted reduction over experts (E is a compile-time constant; static unroll).
    # Each acts slice is an exact 128-lane-multiple block (hp is a 128 multiple).
    acc = gate[:, 0:1] * acts[:, 0:hp]
    for e in range(1, E):
        acc = acc + gate[:, e : e + 1] * acts[:, e * hp : (e + 1) * hp]

    out_ref[...] = acc.astype(out_ref.dtype)


def prepare_moe_params(gate_w, gate_b, expert_w, expert_b):
    """Build the fused, lane-padded weight/bias slabs ONCE (hoisted out of the
    per-call path: rebuilding the slab every forward would re-stream D x E*H f32
    through HBM on every call).

    gate_w: (D, E); gate_b: (1, E); expert_w: (E, D, H); expert_b: (E, H).
    """
    D, E = gate_w.shape
    _, _, H = expert_w.shape
    Hp = _round_up(H, 128)
    Gp = _round_up(E, 128)

    # Expert block: (D, E*Hp), each expert's H columns zero-padded to Hp.
    w_exp = jnp.transpose(expert_w, (1, 0, 2))                            # (D, E, H)
    w_exp = jnp.pad(w_exp, ((0, 0), (0, 0), (0, Hp - H))).reshape(D, E * Hp)
    # Gate block: (D, Gp), zero-padded columns.
    w_gate = jnp.pad(gate_w, ((0, 0), (0, Gp - E)))
    w_slab = jnp.concatenate([w_exp, w_gate], axis=1).astype(jnp.bfloat16)

    # Bias slab stays f32 (added after f32 accumulation). Gate padding columns get a
    # very negative bias so they vanish under softmax.
    b_exp = jnp.pad(expert_b, ((0, 0), (0, Hp - H))).reshape(1, E * Hp)
    b_gate = jnp.concatenate(
        [gate_b.reshape(1, E).astype(jnp.float32),
         jnp.full((1, Gp - E), -1e30, dtype=jnp.float32)],
        axis=1,
    )
    b_slab = jnp.concatenate([b_exp.astype(jnp.float32), b_gate], axis=1)

    return {
        "w_slab": w_slab, "b_slab": b_slab,
        "num_experts": E, "hidden_dim": H, "hp": Hp, "gp": Gp,
    }


def _batch_tiling(B):
    """Returns (padded_batch, batch_tile).

    Large aligned tiles at scale (feed the 128x128 / 256x256 MXU), >= 2 grid steps
    when feasible (so v7x's second TensorCore isn't idle), and batch padded so the
    tile divides it exactly (no degenerate M=8 fallback for awkward batch sizes).
    """
    if B >= 1024:
        tb = 256                     # v6e/v7x MXU-native tile
    elif B >= 256:
        tb = 128                     # >= 2 steps, 128-aligned (v5e-native, fine on all)
    elif B >= 16:
        tb = _round_up(B, 16) // 2   # ~half the batch, 8-aligned -> 2 grid steps
    else:
        tb = 8
    return pl.cdiv(B, tb) * tb, tb


def moe_forward(x, params, *, approx_recip=True):
    """x: (B, D); params: output of prepare_moe_params (reused across calls)."""
    B, D = x.shape
    E = params["num_experts"]
    H = params["hidden_dim"]
    Hp = params["hp"]
    Gp = params["gp"]
    w_slab = params["w_slab"]
    b_slab = params["b_slab"]
    W = E * Hp + Gp

    Bp, tb = _batch_tiling(B)
    x_bf16 = x.astype(jnp.bfloat16)
    if Bp != B:
        x_bf16 = jnp.pad(x_bf16, ((0, Bp - B), (0, 0)))

    grid = (Bp // tb,)

    # Working-set estimate: x double-buffered (bf16), slabs single-buffered,
    # out double-buffered (f32), fused f32 intermediate. 2x headroom, 32 MiB floor,
    # capped at v7x-safe 64 MiB (production sizes need the TODO tiling anyway).
    est = (2 * tb * D * 2
           + D * W * 2 + W * 4
           + 2 * tb * Hp * 4
           + 2 * tb * W * 4)
    vmem_limit = int(min(max(2 * est, 32 * 1024 * 1024), 64 * 1024 * 1024))

    kernel = functools.partial(
        _moe_kernel, num_experts=E, hp=Hp, approx_recip=approx_recip)

    out = pl.pallas_call(
        kernel,
        out_shape=jax.ShapeDtypeStruct((Bp, Hp), x.dtype),
        grid=grid,
        in_specs=[
            # x tile, batch-parallel, default double-buffering.
            # TODO(synk): bump to pl.Buffered(3) if the per-step x DMA shows exposed
            # latency once batch tiles get large.
            pl.BlockSpec((tb, D), lambda i: (i, 0)),
            # Resident weight/bias slabs: constant index_map + single buffer
            # (no pointless double-buffering of constant data).
            pl.BlockSpec((D, W), lambda i: (0, 0), pipeline_mode=pl.Buffered(1)),
            pl.BlockSpec((1, W), lambda i: (0, 0), pipeline_mode=pl.Buffered(1)),
        ],
        out_specs=pl.BlockSpec((tb, Hp), lambda i: (i, 0)),
        compiler_params=pltpu.CompilerParams(
            dimension_semantics=("parallel",),
            vmem_limit_bytes=vmem_limit,
        ),
    )(x_bf16, w_slab, b_slab)

    # Strip batch padding and the per-expert lane padding (Hp -> H).
    return out[:B, :H]


def moe_reference(x, gate_w, gate_b, expert_w, expert_b):
    """Pure-JAX f32 reference mirroring the PyTorch forward (eval mode)."""
    logits = x @ gate_w + gate_b                                    # (B, E)
    gate = jax.nn.softmax(logits, axis=-1)
    expert_out = jax.nn.relu(
        jnp.einsum("bd,edh->beh", x, expert_w) + expert_b[None]
    )                                                               # (B, E, H)
    return jnp.einsum("be,beh->bh", gate, expert_out)


if __name__ == "__main__":
    # Small deterministic config consistent with MoE(input_dim, hidden_dim, num_experts).
    B, D, H, E = 8, 32, 32, 4

    key = jax.random.PRNGKey(0)
    kx, kgw, kgb, kew, keb = jax.random.split(key, 5)

    x = jax.random.normal(kx, (B, D), dtype=jnp.float32)
    # Parameters (deterministic init; nn.Linear weights/biases stored pre-transposed
    # for the x @ W layout).
    gate_w = jax.random.normal(kgw, (D, E), dtype=jnp.float32) * 0.1
    gate_b = jax.random.normal(kgb, (1, E), dtype=jnp.float32) * 0.1
    expert_w = jax.random.normal(kew, (E, D, H), dtype=jnp.float32) * 0.1
    expert_b = jax.random.normal(keb, (E, H), dtype=jnp.float32) * 0.1

    # Slab construction hoisted out of the per-call path: build once, reuse.
    params = jax.block_until_ready(
        prepare_moe_params(gate_w, gate_b, expert_w, expert_b))

    out = moe_forward(x, params)
    out = jax.block_until_ready(out)

    ref = moe_reference(x, gate_w, gate_b, expert_w, expert_b)
    assert out.shape == (B, H), out.shape
    # Tolerance reflects bf16 matmul inputs (f32 accumulation) and the approximate
    # softmax reciprocal vs. the full-f32 reference.
    max_err = jnp.max(jnp.abs(out - ref))
    assert jnp.allclose(out, ref, atol=2e-2, rtol=2e-2), (
        f"mismatch vs reference: max abs err {max_err}"
    )

    print("KERNEL_OK")
</pallas_src>

<mosaic_0001>
module attributes {stable_mosaic.version = 11 : i64} {
  func.func @_moe_kernel(%arg0: i32, %arg1: memref<8x32xbf16, #tpu.memory_space<vmem>>, %arg2: memref<32x640xbf16, #tpu.memory_space<vmem>>, %arg3: memref<1x640xf32, #tpu.memory_space<vmem>>, %arg4: memref<8x128xf32, #tpu.memory_space<vmem>>) attributes {dimension_semantics = [#tpu.dimension_semantics<parallel>], iteration_bounds = array<i64: 1>, scalar_prefetch = 0 : i64, scratch_operands = 0 : i64, tpu.core_type = #tpu.core_type<tc>, window_params = [{transform_indices = @transform_0, window_bounds = array<i64: 8, 32>}, {pipeline_mode = #tpu.pipeline_mode<synchronous>, transform_indices = @transform_1, window_bounds = array<i64: 32, 640>}, {pipeline_mode = #tpu.pipeline_mode<synchronous>, transform_indices = @transform_2, window_bounds = array<i64: 1, 640>}, {transform_indices = @transform_3, window_bounds = array<i64: 8, 128>}]} {
    %c0 = arith.constant 0 : index
    %c0_0 = arith.constant 0 : index
    %0 = vector.load %arg1[%c0, %c0_0] : memref<8x32xbf16, #tpu.memory_space<vmem>>, vector<8x32xbf16>
    %c0_1 = arith.constant 0 : index
    %c0_2 = arith.constant 0 : index
    %1 = vector.load %arg2[%c0_1, %c0_2] : memref<32x640xbf16, #tpu.memory_space<vmem>>, vector<32x640xbf16>
    %cst = arith.constant dense<0.000000e+00> : vector<8x640xf32>
    %2 = tpu.matmul %0, %1, %cst {dimension_numbers = #tpu.dot_dimension_numbers<[1], [0], [0], [1], [0, 0, 1, 1], [], []>} : vector<8x32xbf16>, vector<32x640xbf16>, vector<8x640xf32> -> vector<8x640xf32>
    %c0_3 = arith.constant 0 : index
    %c0_4 = arith.constant 0 : index
    %3 = vector.load %arg3[%c0_3, %c0_4] : memref<1x640xf32, #tpu.memory_space<vmem>>, vector<1x640xf32>
    %4 = vector.broadcast %3 : vector<1x640xf32> to vector<8x640xf32>
    %5 = arith.addf %2, %4 : vector<8x640xf32>
    %6 = vector.extract_strided_slice %5 {offsets = [0, 0], sizes = [8, 512], strides = [1, 1]} : vector<8x640xf32> to vector<8x512xf32>
    %cst_5 = arith.constant 0.000000e+00 : f32
    %7 = vector.broadcast %cst_5 : f32 to vector<8x512xf32>
    %8 = arith.maximumf %6, %7 : vector<8x512xf32>
    %9 = vector.extract_strided_slice %5 {offsets = [0, 512], sizes = [8, 128], strides = [1, 1]} : vector<8x640xf32> to vector<8x128xf32>
    %cst_6 = arith.constant dense<0xFF800000> : vector<8xf32>
    %10 = vector.multi_reduction <maximumf>, %9, %cst_6 [1] : vector<8x128xf32> to vector<8xf32>
    %11 = vector.shape_cast %10 : vector<8xf32> to vector<8x1xf32>
    %12 = vector.broadcast %11 : vector<8x1xf32> to vector<8x128xf32>
    %13 = arith.subf %9, %12 : vector<8x128xf32>
    %14 = math.exp %13 : vector<8x128xf32>
    %cst_7 = arith.constant dense<0.000000e+00> : vector<8xf32>
    %15 = vector.multi_reduction <add>, %14, %cst_7 [1] : vector<8x128xf32> to vector<8xf32>
    %16 = vector.shape_cast %15 : vector<8xf32> to vector<8x1xf32>
    %17 = tpu.reciprocal %16 {approx = true} : vector<8x1xf32> -> vector<8x1xf32>
    %18 = vector.broadcast %17 : vector<8x1xf32> to vector<8x128xf32>
    %19 = arith.mulf %14, %18 : vector<8x128xf32>
    %20 = vector.extract_strided_slice %19 {offsets = [0, 0], sizes = [8, 1], strides = [1, 1]} : vector<8x128xf32> to vector<8x1xf32>
    %21 = vector.extract_strided_slice %8 {offsets = [0, 0], sizes = [8, 128], strides = [1, 1]} : vector<8x512xf32> to vector<8x128xf32>
    %22 = vector.broadcast %20 : vector<8x1xf32> to vector<8x128xf32>
    %23 = arith.mulf %22, %21 : vector<8x128xf32>
    %24 = vector.extract_strided_slice %19 {offsets = [0, 1], sizes = [8, 1], strides = [1, 1]} : vector<8x128xf32> to vector<8x1xf32>
    %25 = vector.extract_strided_slice %8 {offsets = [0, 128], sizes = [8, 128], strides = [1, 1]} : vector<8x512xf32> to vector<8x128xf32>
    %26 = vector.broadcast %24 : vector<8x1xf32> to vector<8x128xf32>
    %27 = arith.mulf %26, %25 : vector<8x128xf32>
    %28 = arith.addf %23, %27 : vector<8x128xf32>
    %29 = vector.extract_strided_slice %19 {offsets = [0, 2], sizes = [8, 1], strides = [1, 1]} : vector<8x128xf32> to vector<8x1xf32>
    %30 = vector.extract_strided_slice %8 {offsets = [0, 256], sizes = [8, 128], strides = [1, 1]} : vector<8x512xf32> to vector<8x128xf32>
    %31 = vector.broadcast %29 : vector<8x1xf32> to vector<8x128xf32>
    %32 = arith.mulf %31, %30 : vector<8x128xf32>
    %33 = arith.addf %28, %32 : vector<8x128xf32>
    %34 = vector.extract_strided_slice %19 {offsets = [0, 3], sizes = [8, 1], strides = [1, 1]} : vector<8x128xf32> to vector<8x1xf32>
    %35 = vector.extract_strided_slice %8 {offsets = [0, 384], sizes = [8, 128], strides = [1, 1]} : vector<8x512xf32> to vector<8x128xf32>
    %36 = vector.broadcast %34 : vector<8x1xf32> to vector<8x128xf32>
    %37 = arith.mulf %36, %35 : vector<8x128xf32>
    %38 = arith.addf %33, %37 : vector<8x128xf32>
    %c0_8 = arith.constant 0 : index
    %c0_9 = arith.constant 0 : index
    %39 = vector.load %arg4[%c0_8, %c0_9] : memref<8x128xf32, #tpu.memory_space<vmem>>, vector<8x128xf32>
    tpu.vector_store %arg4[%c0_8, %c0_9], %38 {strides = array<i32>} : memref<8x128xf32, #tpu.memory_space<vmem>>, vector<8x128xf32>,
    return
  }
  func.func @transform_0(%arg0: i32) -> (i32, i32) {
    %c0_i32 = arith.constant 0 : i32
    %c0_i32_0 = arith.constant 0 : i32
    return %arg0, %c0_i32 : i32, i32
  }
  func.func @transform_1(%arg0: i32) -> (i32, i32) {
    %c0_i32 = arith.constant 0 : i32
    %c0_i32_0 = arith.constant 0 : i32
    %c0_i32_1 = arith.constant 0 : i32
    return %c0_i32, %c0_i32_0 : i32, i32
  }
  func.func @transform_2(%arg0: i32) -> (i32, i32) {
    %c0_i32 = arith.constant 0 : i32
    %c0_i32_0 = arith.constant 0 : i32
    %c0_i32_1 = arith.constant 0 : i32
    return %c0_i32, %c0_i32_0 : i32, i32
  }
  func.func @transform_3(%arg0: i32) -> (i32, i32) {
    %c0_i32 = arith.constant 0 : i32
    %c0_i32_0 = arith.constant 0 : i32
    return %arg0, %c0_i32 : i32, i32
  }
}

</mosaic_0001>

<bundles_post_ra>
// kernel: tpu_custom_call.1
= control target key start
LH: loop header
LB: loop body
LE: loop exit
PB: predicated region body
PF: predicated region fallthrough
CT: control target
= control target key end

     0   :  { %8 = vsyncpa [#allocation3], 0  ;;  %s517_s0 = inlined_call_operand.hbm [shape: bf16[8,32], index: 0, kind: input, shape index: {}]   ;;  %s518_s1 = inlined_call_operand.hbm [shape: bf16[32,640], index: 1, kind: input, shape index: {}]   ;;  %s519_s2 = inlined_call_operand.hbm [shape: f32[1,640], index: 2, kind: input, shape index: {}]   ;;  %s520_s3 = inlined_call_operand.hbm [shape: f32[8,128], index: 3, kind: output, shape index: {}]  }
   0x1   :  { %9 = vsyncpa [#allocation6], 0 }
   0x2   :  { %10 = vsyncpa [#allocation4], 0  ;;  %s470_s12 = smov [#allocation5]  }
   0x3   :  { %s26_s13 = sshll.u32 %s470_s12, 4  ;;  %s27_s13 = int_to_ptr.vmem [resolvable:$true] %s26_s13 }
   0x4   :  { %s392_s14 = scalar_lea.vmem %s27_s13, 1280  ;;  %p397_p1 = scmp.lt.s32.totalorder %s27_s13, %s27_s13 }
   0x5   :  { %p393_p0 = scmp.ne.s32.totalorder %s27_s13, %s392_s14  ;;  %p398_p2 = scmp.lt.s32.totalorder %s392_s14, %s392_s14 }
   0x7   :  { %p399_p3 = por %p398_p2, %p397_p1 }
   0x9   :  { %p400_p4 = pnand %p399_p3, %p393_p0 }
   0xb   :  { %403 = shalt.err (!%p400_p4)
}
   0xc   :  { %s471_s15 = smov 320   ;;  %s472_s16 = smov 20  }
   0xd   :  { %32 = dma.hbm_to_vmem [thread:$0]  %s518_s1, 1280, %s27_s13, [#allocation6], %s471_s15, %s471_s15, %s472_s16  }
   0xe   :  { %s473_s19 = smov [#allocation2]   ;;  %s474_s21 = smov [#allocation7]  }
   0xf   :  { %s17_s20 = sshll.u32 %s473_s19, 4  ;;  %s39_s22 = sshll.u32 %s474_s21, 4  ;;  %s18_s20 = int_to_ptr.vmem [resolvable:$true] %s17_s20  ;;  %s40_s22 = int_to_ptr.vmem [resolvable:$true] %s39_s22 }
  0x10   :  { %s412_s23 = scalar_lea.vmem %s18_s20, 64  ;;  %p417_p6 = scmp.lt.s32.totalorder %s18_s20, %s18_s20 }
  0x11   :  { %p413_p5 = scmp.ne.s32.totalorder %s18_s20, %s412_s23  ;;  %p418_p7 = scmp.lt.s32.totalorder %s412_s23, %s412_s23 }
  0x13   :  { %p419_p8 = por %p418_p7, %p417_p6 }
  0x15   :  { %p420_p9 = pnand %p419_p8, %p413_p5 }
  0x17   :  { %423 = shalt.err (!%p420_p9)
}
  0x18   :  { %20 = dma.hbm_to_vmem [thread:$0]  %s517_s0, 64, %s18_s20, [#allocation3]  }
  0x19   :  { %s432_s26 = scalar_lea.vmem %s40_s22, 80  ;;  %s436_s1 = scalar_lea.vmem %s40_s22, 96 }
  0x1a   :  { %p433_p10 = scmp.ne.s32.totalorder %s40_s22, %s432_s26  ;;  %p437_p11 = scmp.lt.s32.totalorder %s40_s22, %s40_s22 }
  0x1b   :  { %p438_p12 = scmp.lt.s32.totalorder %s436_s1, %s432_s26 }
  0x1d   :  { %p439_p13 = por %p438_p12, %p437_p11 }
  0x1f   :  { %p440_p0 = pnand %p439_p13, %p433_p10 }
  0x21   :  { %443 = shalt.err (!%p440_p0)
}
  0x22   :  { %42 = dma.hbm_to_vmem [thread:$0]  %s519_s2, 80, %s40_s22, [#allocation6]  }
  0x23   :  { %464 = dma.done.wait [#allocation3], 64  }
  0x24   :  { %465 = vsyncadd [#allocation3], 4294967232 }
  0x25   :  { %466 = dma.done.wait [#allocation6], 1360  }
  0x26   :  { %467 = vsyncadd [#allocation6], 4294965936  ;;  %v475_v0 = vmov 0   ;;  %v366_v1 = vld [vmem:[#allocation5 + $0x2c] ss:$20 sps:$4 sm:$0xff]   ;;  %vm145_vm0 = vcmask 261120   ;;  %v68_v9 = vlaneseq }
  0x27   :  { %181 = vmatprep.mubr.bf16.mxu0 %v475_v0  ;;  %222 = vmatprep.mubr.bf16.mxu1 %v475_v0  ;;  %v368_v2 = vld [vmem:[#allocation5 + $0x28] ss:$20 sps:$4 sm:$0xff]   ;;  %v369_v3 = vld [vmem:[#allocation5 + $0x4] ss:$20 sps:$4 sm:$0xff]   ;;  %v371_v4 = vld [vmem:[#allocation5] ss:$20 sps:$4 sm:$0xff]  }
  0x28   :  { %361 = vset.pattern.permute.xlu1 %v475_v0  ;;  %161 = vmatprep.subr.bf16.mxu0 %v366_v1  ;;  %v53_v5 = vld [vmem:[#allocation2] sm:$0xf]  ;;  %v372_v6 = vld [vmem:[#allocation5 + $0x38] ss:$20 sps:$4 sm:$0xff]   ;;  %v476_v7 = vmov 0.0   ;;  %vm477_vm1 = vmmov 0  }
  0x29   :  { %162 = vmatpush1.bf16.msra.mxu0 %v368_v2  ;;  %v373_v8 = vld [vmem:[#allocation5 + $0x10] ss:$20 sps:$4 sm:$0xff]   ;;  %v69_v10 = vshrl.u32 %v68_v9, 7  ;;  %v374_v23 = vld [vmem:[#allocation5 + $0x34] ss:$20 sps:$4 sm:$0xff]   ;;  %v478_v31 = vmov 2  }
  0x2a   :  { %163 = vmatprep.subr.bf16.mxu0 %v369_v3  ;;  %v66_v14 = vld [vmem:[#allocation7] sm:$0x1f]  ;;  %v377_v25 = vld [vmem:[#allocation5 + $0xc] ss:$20 sps:$4 sm:$0xff]   ;;  %202 = vmatprep.subr.bf16.mxu1 %v374_v23  ;;  %v379_v26 = vld [vmem:[#allocation5 + $0x8] ss:$20 sps:$4 sm:$0xff]  }
  0x2b   :  { %v86_v12 = vsub.s32 4, %v69_v10  ;;  %v376_v24 = vld [vmem:[#allocation5 + $0x30] ss:$20 sps:$4 sm:$0xff]   ;;  %363 = vset.pattern.permute.xlu0 %v478_v31  ;;  %v479_v39 = vmov 1   ;;  %v480_v40 = vmov 3   ;;  %v70_v41 = vsub.s32 0, %v69_v10 }
  0x2c   :  { %203 = vmatpush1.bf16.msra.mxu1 %v376_v24  ;;  %v74_v42 = vsub.s32 1, %v69_v10  ;;  %v78_v43 = vsub.s32 2, %v69_v10  ;;  %v82_v47 = vsub.s32 3, %v69_v10  ;;  %s481_s0 = smov [#allocation8]  }
  0x2d   :  { %164 = vmatpush1.bf16.msra.mxu0 %v371_v4  ;;  %v87_v16 = vrot.slane %v66_v14, %v86_v12  ;;  %204 = vmatprep.subr.bf16.mxu1 %v377_v25  ;;  %v71_v44 = vrot.slane %v66_v14, %v70_v41  ;;  %s315_s2 = sshll.u32 %s481_s0, 4  ;;  %s316_s2 = int_to_ptr.vmem [resolvable:$true] %s315_s2 }
  0x2e   :  { %341 = vmatprep.subr.bf16.mxu0 %v476_v7  ;;  %v75_v45 = vrot.slane %v66_v14, %v74_v42  ;;  %v79_v46 = vrot.slane %v66_v14, %v78_v43  ;;  %v83_v52 = vrot.slane %v66_v14, %v82_v47  ;;  %s444_s29 = scalar_lea.vmem %s316_s2, 128  ;;  %p449_p2 = scmp.lt.s32.totalorder %s316_s2, %s316_s2 }
  0x2f   :  { %p445_p1 = scmp.ne.s32.totalorder %s316_s2, %s444_s29  ;;  %p450_p3 = scmp.lt.s32.totalorder %s444_s29, %s444_s29 }
  0x30   :  { %335 = vmatmul.mubr.msk.bf16.vlgmr.msra.gmra.mxu0 %vm145_vm0, %v53_v5  ;;  %205 = vmatpush1.bf16.msra.mxu1 %v379_v26 }
  0x31   :  { %342 = vmatpush3.bf16.msra.mxu0 %v372_v6  ;;  %345 = vmatprep.mubr.msk.bf16.mxu0 %vm477_vm1, %v476_v7  ;;  %p451_p4 = por %p450_p3, %p449_p2 }
  0x32   :  { %343 = vmatprep.subr.bf16.mxu0 %v476_v7 }
  0x33   :  { %336 = vmatmul.mubr.msk.bf16.vlgmr.msra.gmra.mxu1 %vm145_vm0, %v53_v5  ;;  %p452_p5 = pnand %p451_p4, %p445_p1 }
  0x35   :  { %344 = vmatpush3.bf16.msra.mxu0 %v373_v8 }
  0x38   :  { %346 = vmatmul.mubr.msk.bf16.vlgmr.msra.gmra.mxu0 %vm145_vm0, %v53_v5 }
  0xf0   :  { %v183_v11 = vpop.f32.mrf.mxu0 }
  0xf1   :  { %v184_v48 = vadd.f32 %v183_v11, %v71_v44 }
  0xf2   :  { %v185_v13 = vpop.f32.mrf.mxu0 }
  0xf3   :  { %v224_v33 = vpop.f32.mrf.mxu1  ;;  %v186_v49 = vadd.f32 %v185_v13, %v75_v45  ;;  %v271_v53 = vmax.f32 %v184_v48, 0.0 }
  0xf4   :  { %v187_v15 = vpop.f32.mrf.mxu0  ;;  %v225_v50 = vadd.f32 %v224_v33, %v79_v46 }
  0xf5   :  { %v226_v34 = vpop.f32.mrf.mxu1  ;;  %v272_v54 = vmax.f32 %v186_v49, 0.0 }
  0xf6   :  { %v188_v17 = vpop.f32.mrf.mxu0  ;;  %v273_v55 = vmax.f32 %v225_v50, 0.0  ;;  %v227_v57 = vadd.f32 %v226_v34, %v83_v52 }
  0xf7   :  { %v228_v36 = vpop.f32.mrf.mxu1 }
  0xf8   :  { %v265_v18 = vpop.f32.mrf.mxu0  ;;  %v274_v63 = vmax.f32 %v227_v57, 0.0 }
  0xf9   :  { %v266_v19 = vadd.f32 %v265_v18, %v87_v16  ;;  %v229_v38 = vpop.f32.mrf.mxu1 }
  0xfa   :  { %v347_v20 = vpop.f32.mrf.mxu0 }
  0xfb   :  { %275 = vmax.xlane.f32.xlu0 %v266_v19 }
  0xfc   :  { %v268_v21 = vpop.f32.mrf.mxu0 }
  0xfe   :  { %v348_v22 = vpop.f32.mrf.mxu0 }
 0x184   :  { %v276_v27 = vpop.xlane.xlu0 %275 }
 0x185   :  { %v277_v28 = vsub.f32 %v266_v19, %v276_v27 }
 0x187   :  { %v278_v29 = vmul.f32 1.442695, %v277_v28 }
 0x189   :  { %380 = vpow2.f32 %v278_v29 }
 0x196   :  { %v381_v30 = vpop.eup %380 }
 0x197   :  { %280 = vadd.xlane.f32.xlu0 %v381_v30 }
 0x220   :  { %v281_v32 = vpop.xlane.xlu0 %280 }
 0x221   :  { %382 = vrcp.f32 %v281_v32 }
 0x22e   :  { %v383_v35 = vpop.eup %382 }
 0x22f   :  { %v283_v37 = vmul.f32 %v383_v35, %v381_v30 }
 0x231   :  { %297 = vperm.xlu0 %363, %v283_v37   ;;  %286 = vperm.xlu1 %361, %v283_v37  }
 0x235   :  { %362 = vset.pattern.permute.xlu1 %v479_v39  ;;  %365 = vset.pattern.permute.xlu0 %v480_v40 }
 0x236   :  { %291 = vperm.xlu1 %362, %v283_v37  }
 0x23a   :  { %364 = vset.pattern.permute.xlu1 %v480_v40 }
 0x23b   :  { %303 = vperm.xlu1 %364, %v283_v37  }
 0x2ac   :  { %v287_v51 = vpop.permute.xlu1 %286  ;;  %v298_v56 = vpop.permute.xlu0 %297 }
 0x2ad   :  { %v289_v59 = vmul.f32 %v287_v51, %v271_v53  ;;  %v300_v61 = vmul.f32 %v298_v56, %v273_v55 }
 0x2b1   :  { %v292_v58 = vpop.permute.xlu1 %291 }
 0x2b2   :  { %v294_v60 = vmul.f32 %v292_v58, %v272_v54 }
 0x2b4   :  { %v295_v62 = vadd.f32 %v294_v60, %v289_v59 }
 0x2b6   :  { %v304_v0 = vpop.permute.xlu1 %303  ;;  %v301_v1 = vadd.f32 %v300_v61, %v295_v62 }
 0x2b7   :  { %v306_v2 = vmul.f32 %v304_v0, %v274_v63 }
 0x2b9   :  { %v307_v3 = vadd.f32 %v306_v2, %v301_v1 }
 0x2bb   :  { %308 = vst [vmem:[#allocation8] sm:$0xff] %v307_v3 }
 0x2bc   :  { %455 = shalt.err (!%p452_p5)
}
 0x2bd   :  { %318 = dma.vmem_to_hbm [thread:$0]  %s316_s2, 128, %s520_s3, [#allocation4]  }
 0x2be   :  { %468 = dma.done.wait [#allocation4], 128  }
 0x2bf   :  { %469 = vsyncadd [#allocation4], 4294967168 }
 0x2c0   :  { %322 = vsyncpa [#allocation3], 1 }
 0x2c1   :  { %323 = vsyncpa [#allocation6], 1 }
 0x2c2   :  { %324 = vsyncpa [#allocation4], 1 }

</bundles_post_ra>
